<compile_context>
chip_gen: v7x
topology: tpu7x:2x2x1
jax: 0.10.0
libtpu: 0.0.40
codegen_flags: <defaults>
</compile_context>

<pallas_src>
import jax
import jax.numpy as jnp
from jax.experimental import pallas as pl
from jax.experimental.pallas import tpu as pltpu

LANE = 128      # TPU lane width
SUBLANE = 8     # f32 sublane tile


def _round_up(n, m):
    return ((n + m - 1) // m) * m


def autoencoder_kernel(x_ref,
                       w1, b1, w2, b2, w3, b3,   # encoder
                       w4, b4, w5, b5, w6, b6,   # decoder
                       o_ref):
    """Fused encoder/decoder MLP (padded dims): Fp->128->128->128->128->128->Fp."""
    h = x_ref[...]

    # encoder (Linear + ReLU)
    h = jnp.maximum(jnp.dot(h, w1[...], preferred_element_type=jnp.float32) + b1[...], 0.0)
    h = jnp.maximum(jnp.dot(h, w2[...], preferred_element_type=jnp.float32) + b2[...], 0.0)
    h = jnp.maximum(jnp.dot(h, w3[...], preferred_element_type=jnp.float32) + b3[...], 0.0)

    # decoder (Linear + ReLU, last layer has no ReLU)
    h = jnp.maximum(jnp.dot(h, w4[...], preferred_element_type=jnp.float32) + b4[...], 0.0)
    h = jnp.maximum(jnp.dot(h, w5[...], preferred_element_type=jnp.float32) + b5[...], 0.0)
    h = jnp.dot(h, w6[...], preferred_element_type=jnp.float32) + b6[...]

    o_ref[...] = h.astype(o_ref.dtype)


def _pad_linear(w, b, in_pad, out_pad):
    """Zero-pad a (in, out) weight and (out,) bias to (in_pad, out_pad)/(out_pad,)."""
    fi, fo = w.shape
    w = jnp.pad(w, ((0, in_pad - fi), (0, out_pad - fo)))
    b = jnp.pad(b, ((0, out_pad - fo),))
    return w, b.reshape(1, -1)   # keep bias 2D for TPU layout


def autoencoder_forward(x, params, *, batch_tile=1024):
    """x: (B, input_dim) f32.  params: list of 6 (W, b) with W in (in, out) layout."""
    B, F = x.shape
    dims = [F] + [w.shape[1] for (w, _) in params]           # [F, 32, 16, 8, 16, 32, F]
    pdims = [_round_up(max(d, LANE), LANE) for d in dims]     # all lane-dense
    Fp = pdims[0]

    # ---- pad input feature dim (zero padding => exact) ----
    if Fp != F:
        x = jnp.pad(x, ((0, 0), (0, Fp - F)))

    # ---- pad batch dim to a multiple of the batch tile ----
    Bp = _round_up(max(B, SUBLANE), SUBLANE)
    TB = min(batch_tile, Bp)
    Bp = _round_up(Bp, TB)
    if Bp != B:
        x = jnp.pad(x, ((0, Bp - B), (0, 0)))

    # ---- pad every layer's weights/biases to lane-dense shapes ----
    flat = []
    for li, (w, b) in enumerate(params):
        wp, bp = _pad_linear(w, b, pdims[li], pdims[li + 1])
        flat.append(wp)
        flat.append(bp)

    grid = (Bp // TB,)

    x_spec = pl.BlockSpec((TB, Fp), lambda i: (i, 0))
    # Weights/biases: full-array blocks, same block index every step -> resident in VMEM.
    w_specs = [pl.BlockSpec(a.shape, lambda i: (0, 0)) for a in flat]
    out_spec = pl.BlockSpec((TB, Fp), lambda i: (i, 0))

    out = pl.pallas_call(
        autoencoder_kernel,
        out_shape=jax.ShapeDtypeStruct((Bp, Fp), x.dtype),
        grid=grid,
        in_specs=[x_spec] + w_specs,
        out_specs=out_spec,
        compiler_params=pltpu.CompilerParams(dimension_semantics=("parallel",)),
    )(x, *flat)

    return out[:B, :F]


def init_linear(key, fan_in, fan_out):
    """Deterministic init mimicking nn.Linear (uniform +/- 1/sqrt(fan_in)).

    Weight stored as (fan_in, fan_out) so the kernel does x @ W directly,
    semantically identical to PyTorch's x @ W_pt.T.
    """
    kw, kb = jax.random.split(key)
    bound = 1.0 / jnp.sqrt(fan_in)
    w = jax.random.uniform(kw, (fan_in, fan_out), jnp.float32, -bound, bound)
    b = jax.random.uniform(kb, (fan_out,), jnp.float32, -bound, bound)
    return w, b


def make_params(key, input_dim):
    dims = [(input_dim, 32), (32, 16), (16, 8),      # encoder
            (8, 16), (16, 32), (32, input_dim)]      # decoder
    keys = jax.random.split(key, len(dims))
    return [init_linear(k, fi, fo) for k, (fi, fo) in zip(keys, dims)]


def reference_forward(x, params):
    """Plain-JAX reference for verification."""
    h = x
    for i, (w, b) in enumerate(params):
        h = h @ w + b
        if i != len(params) - 1:
            h = jnp.maximum(h, 0.0)
    return h


if __name__ == "__main__":
    key = jax.random.PRNGKey(0)
    k_x, k_p = jax.random.split(key)

    B, INPUT_DIM = 8, 64
    x = jax.random.normal(k_x, (B, INPUT_DIM), jnp.float32)
    params = make_params(k_p, INPUT_DIM)

    out = autoencoder_forward(x, params)
    out = jax.block_until_ready(out)

    ref = reference_forward(x, params)
    assert out.shape == (B, INPUT_DIM)
    assert jnp.allclose(out, ref, atol=1e-5, rtol=1e-5), "mismatch vs reference"

    # Exercise a multi-step batch grid (resident weights, pipelined x/out tiles).
    B2 = 24
    x2 = jax.random.normal(jax.random.PRNGKey(1), (B2, INPUT_DIM), jnp.float32)
    out2 = jax.block_until_ready(autoencoder_forward(x2, params, batch_tile=8))
    ref2 = reference_forward(x2, params)
    assert out2.shape == (B2, INPUT_DIM)
    assert jnp.allclose(out2, ref2, atol=1e-5, rtol=1e-5), "mismatch vs reference (gridded)"

    print("KERNEL_OK")
</pallas_src>

<mosaic_0001>
module attributes {stable_mosaic.version = 11 : i64} {
  func.func @autoencoder_kernel(%arg0: i32, %arg1: memref<8x128xf32, #tpu.memory_space<vmem>>, %arg2: memref<128x128xf32, #tpu.memory_space<vmem>>, %arg3: memref<1x128xf32, #tpu.memory_space<vmem>>, %arg4: memref<128x128xf32, #tpu.memory_space<vmem>>, %arg5: memref<1x128xf32, #tpu.memory_space<vmem>>, %arg6: memref<128x128xf32, #tpu.memory_space<vmem>>, %arg7: memref<1x128xf32, #tpu.memory_space<vmem>>, %arg8: memref<128x128xf32, #tpu.memory_space<vmem>>, %arg9: memref<1x128xf32, #tpu.memory_space<vmem>>, %arg10: memref<128x128xf32, #tpu.memory_space<vmem>>, %arg11: memref<1x128xf32, #tpu.memory_space<vmem>>, %arg12: memref<128x128xf32, #tpu.memory_space<vmem>>, %arg13: memref<1x128xf32, #tpu.memory_space<vmem>>, %arg14: memref<8x128xf32, #tpu.memory_space<vmem>>) attributes {dimension_semantics = [#tpu.dimension_semantics<parallel>], iteration_bounds = array<i64: 1>, scalar_prefetch = 0 : i64, scratch_operands = 0 : i64, tpu.core_type = #tpu.core_type<tc>, window_params = [{transform_indices = @transform_0, window_bounds = array<i64: 8, 128>}, {pipeline_mode = #tpu.pipeline_mode<synchronous>, transform_indices = @transform_1, window_bounds = array<i64: 128, 128>}, {pipeline_mode = #tpu.pipeline_mode<synchronous>, transform_indices = @transform_2, window_bounds = array<i64: 1, 128>}, {pipeline_mode = #tpu.pipeline_mode<synchronous>, transform_indices = @transform_3, window_bounds = array<i64: 128, 128>}, {pipeline_mode = #tpu.pipeline_mode<synchronous>, transform_indices = @transform_4, window_bounds = array<i64: 1, 128>}, {pipeline_mode = #tpu.pipeline_mode<synchronous>, transform_indices = @transform_5, window_bounds = array<i64: 128, 128>}, {pipeline_mode = #tpu.pipeline_mode<synchronous>, transform_indices = @transform_6, window_bounds = array<i64: 1, 128>}, {pipeline_mode = #tpu.pipeline_mode<synchronous>, transform_indices = @transform_7, window_bounds = array<i64: 128, 128>}, {pipeline_mode = #tpu.pipeline_mode<synchronous>, transform_indices = @transform_8, window_bounds = array<i64: 1, 128>}, {pipeline_mode = #tpu.pipeline_mode<synchronous>, transform_indices = @transform_9, window_bounds = array<i64: 128, 128>}, {pipeline_mode = #tpu.pipeline_mode<synchronous>, transform_indices = @transform_10, window_bounds = array<i64: 1, 128>}, {pipeline_mode = #tpu.pipeline_mode<synchronous>, transform_indices = @transform_11, window_bounds = array<i64: 128, 128>}, {pipeline_mode = #tpu.pipeline_mode<synchronous>, transform_indices = @transform_12, window_bounds = array<i64: 1, 128>}, {transform_indices = @transform_13, window_bounds = array<i64: 8, 128>}]} {
    %c0 = arith.constant 0 : index
    %c0_0 = arith.constant 0 : index
    %0 = vector.load %arg1[%c0, %c0_0] : memref<8x128xf32, #tpu.memory_space<vmem>>, vector<8x128xf32>
    %c0_1 = arith.constant 0 : index
    %c0_2 = arith.constant 0 : index
    %1 = vector.load %arg2[%c0_1, %c0_2] : memref<128x128xf32, #tpu.memory_space<vmem>>, vector<128x128xf32>
    %cst = arith.constant dense<0.000000e+00> : vector<8x128xf32>
    %2 = tpu.matmul %0, %1, %cst {dimension_numbers = #tpu.dot_dimension_numbers<[1], [0], [0], [1], [0, 0, 1, 1], [], []>} : vector<8x128xf32>, vector<128x128xf32>, vector<8x128xf32> -> vector<8x128xf32>
    %c0_3 = arith.constant 0 : index
    %c0_4 = arith.constant 0 : index
    %3 = vector.load %arg3[%c0_3, %c0_4] : memref<1x128xf32, #tpu.memory_space<vmem>>, vector<1x128xf32>
    %4 = vector.broadcast %3 : vector<1x128xf32> to vector<8x128xf32>
    %5 = arith.addf %2, %4 : vector<8x128xf32>
    %cst_5 = arith.constant 0.000000e+00 : f32
    %6 = vector.broadcast %cst_5 : f32 to vector<8x128xf32>
    %7 = arith.maximumf %5, %6 : vector<8x128xf32>
    %c0_6 = arith.constant 0 : index
    %c0_7 = arith.constant 0 : index
    %8 = vector.load %arg4[%c0_6, %c0_7] : memref<128x128xf32, #tpu.memory_space<vmem>>, vector<128x128xf32>
    %cst_8 = arith.constant dense<0.000000e+00> : vector<8x128xf32>
    %9 = tpu.matmul %7, %8, %cst_8 {dimension_numbers = #tpu.dot_dimension_numbers<[1], [0], [0], [1], [0, 0, 1, 1], [], []>} : vector<8x128xf32>, vector<128x128xf32>, vector<8x128xf32> -> vector<8x128xf32>
    %c0_9 = arith.constant 0 : index
    %c0_10 = arith.constant 0 : index
    %10 = vector.load %arg5[%c0_9, %c0_10] : memref<1x128xf32, #tpu.memory_space<vmem>>, vector<1x128xf32>
    %11 = vector.broadcast %10 : vector<1x128xf32> to vector<8x128xf32>
    %12 = arith.addf %9, %11 : vector<8x128xf32>
    %cst_11 = arith.constant 0.000000e+00 : f32
    %13 = vector.broadcast %cst_11 : f32 to vector<8x128xf32>
    %14 = arith.maximumf %12, %13 : vector<8x128xf32>
    %c0_12 = arith.constant 0 : index
    %c0_13 = arith.constant 0 : index
    %15 = vector.load %arg6[%c0_12, %c0_13] : memref<128x128xf32, #tpu.memory_space<vmem>>, vector<128x128xf32>
    %cst_14 = arith.constant dense<0.000000e+00> : vector<8x128xf32>
    %16 = tpu.matmul %14, %15, %cst_14 {dimension_numbers = #tpu.dot_dimension_numbers<[1], [0], [0], [1], [0, 0, 1, 1], [], []>} : vector<8x128xf32>, vector<128x128xf32>, vector<8x128xf32> -> vector<8x128xf32>
    %c0_15 = arith.constant 0 : index
    %c0_16 = arith.constant 0 : index
    %17 = vector.load %arg7[%c0_15, %c0_16] : memref<1x128xf32, #tpu.memory_space<vmem>>, vector<1x128xf32>
    %18 = vector.broadcast %17 : vector<1x128xf32> to vector<8x128xf32>
    %19 = arith.addf %16, %18 : vector<8x128xf32>
    %cst_17 = arith.constant 0.000000e+00 : f32
    %20 = vector.broadcast %cst_17 : f32 to vector<8x128xf32>
    %21 = arith.maximumf %19, %20 : vector<8x128xf32>
    %c0_18 = arith.constant 0 : index
    %c0_19 = arith.constant 0 : index
    %22 = vector.load %arg8[%c0_18, %c0_19] : memref<128x128xf32, #tpu.memory_space<vmem>>, vector<128x128xf32>
    %cst_20 = arith.constant dense<0.000000e+00> : vector<8x128xf32>
    %23 = tpu.matmul %21, %22, %cst_20 {dimension_numbers = #tpu.dot_dimension_numbers<[1], [0], [0], [1], [0, 0, 1, 1], [], []>} : vector<8x128xf32>, vector<128x128xf32>, vector<8x128xf32> -> vector<8x128xf32>
    %c0_21 = arith.constant 0 : index
    %c0_22 = arith.constant 0 : index
    %24 = vector.load %arg9[%c0_21, %c0_22] : memref<1x128xf32, #tpu.memory_space<vmem>>, vector<1x128xf32>
    %25 = vector.broadcast %24 : vector<1x128xf32> to vector<8x128xf32>
    %26 = arith.addf %23, %25 : vector<8x128xf32>
    %cst_23 = arith.constant 0.000000e+00 : f32
    %27 = vector.broadcast %cst_23 : f32 to vector<8x128xf32>
    %28 = arith.maximumf %26, %27 : vector<8x128xf32>
    %c0_24 = arith.constant 0 : index
    %c0_25 = arith.constant 0 : index
    %29 = vector.load %arg10[%c0_24, %c0_25] : memref<128x128xf32, #tpu.memory_space<vmem>>, vector<128x128xf32>
    %cst_26 = arith.constant dense<0.000000e+00> : vector<8x128xf32>
    %30 = tpu.matmul %28, %29, %cst_26 {dimension_numbers = #tpu.dot_dimension_numbers<[1], [0], [0], [1], [0, 0, 1, 1], [], []>} : vector<8x128xf32>, vector<128x128xf32>, vector<8x128xf32> -> vector<8x128xf32>
    %c0_27 = arith.constant 0 : index
    %c0_28 = arith.constant 0 : index
    %31 = vector.load %arg11[%c0_27, %c0_28] : memref<1x128xf32, #tpu.memory_space<vmem>>, vector<1x128xf32>
    %32 = vector.broadcast %31 : vector<1x128xf32> to vector<8x128xf32>
    %33 = arith.addf %30, %32 : vector<8x128xf32>
    %cst_29 = arith.constant 0.000000e+00 : f32
    %34 = vector.broadcast %cst_29 : f32 to vector<8x128xf32>
    %35 = arith.maximumf %33, %34 : vector<8x128xf32>
    %c0_30 = arith.constant 0 : index
    %c0_31 = arith.constant 0 : index
    %36 = vector.load %arg12[%c0_30, %c0_31] : memref<128x128xf32, #tpu.memory_space<vmem>>, vector<128x128xf32>
    %cst_32 = arith.constant dense<0.000000e+00> : vector<8x128xf32>
    %37 = tpu.matmul %35, %36, %cst_32 {dimension_numbers = #tpu.dot_dimension_numbers<[1], [0], [0], [1], [0, 0, 1, 1], [], []>} : vector<8x128xf32>, vector<128x128xf32>, vector<8x128xf32> -> vector<8x128xf32>
    %c0_33 = arith.constant 0 : index
    %c0_34 = arith.constant 0 : index
    %38 = vector.load %arg13[%c0_33, %c0_34] : memref<1x128xf32, #tpu.memory_space<vmem>>, vector<1x128xf32>
    %39 = vector.broadcast %38 : vector<1x128xf32> to vector<8x128xf32>
    %40 = arith.addf %37, %39 : vector<8x128xf32>
    %c0_35 = arith.constant 0 : index
    %c0_36 = arith.constant 0 : index
    %41 = vector.load %arg14[%c0_35, %c0_36] : memref<8x128xf32, #tpu.memory_space<vmem>>, vector<8x128xf32>
    tpu.vector_store %arg14[%c0_35, %c0_36], %40 {strides = array<i32>} : memref<8x128xf32, #tpu.memory_space<vmem>>, vector<8x128xf32>,
    return
  }
  func.func @transform_0(%arg0: i32) -> (i32, i32) {
    %c0_i32 = arith.constant 0 : i32
    %c0_i32_0 = arith.constant 0 : i32
    return %arg0, %c0_i32 : i32, i32
  }
  func.func @transform_1(%arg0: i32) -> (i32, i32) {
    %c0_i32 = arith.constant 0 : i32
    %c0_i32_0 = arith.constant 0 : i32
    %c0_i32_1 = arith.constant 0 : i32
    return %c0_i32, %c0_i32_0 : i32, i32
  }
  func.func @transform_2(%arg0: i32) -> (i32, i32) {
    %c0_i32 = arith.constant 0 : i32
    %c0_i32_0 = arith.constant 0 : i32
    %c0_i32_1 = arith.constant 0 : i32
    return %c0_i32, %c0_i32_0 : i32, i32
  }
  func.func @transform_3(%arg0: i32) -> (i32, i32) {
    %c0_i32 = arith.constant 0 : i32
    %c0_i32_0 = arith.constant 0 : i32
    %c0_i32_1 = arith.constant 0 : i32
    return %c0_i32, %c0_i32_0 : i32, i32
  }
  func.func @transform_4(%arg0: i32) -> (i32, i32) {
    %c0_i32 = arith.constant 0 : i32
    %c0_i32_0 = arith.constant 0 : i32
    %c0_i32_1 = arith.constant 0 : i32
    return %c0_i32, %c0_i32_0 : i32, i32
  }
  func.func @transform_5(%arg0: i32) -> (i32, i32) {
    %c0_i32 = arith.constant 0 : i32
    %c0_i32_0 = arith.constant 0 : i32
    %c0_i32_1 = arith.constant 0 : i32
    return %c0_i32, %c0_i32_0 : i32, i32
  }
  func.func @transform_6(%arg0: i32) -> (i32, i32) {
    %c0_i32 = arith.constant 0 : i32
    %c0_i32_0 = arith.constant 0 : i32
    %c0_i32_1 = arith.constant 0 : i32
    return %c0_i32, %c0_i32_0 : i32, i32
  }
  func.func @transform_7(%arg0: i32) -> (i32, i32) {
    %c0_i32 = arith.constant 0 : i32
    %c0_i32_0 = arith.constant 0 : i32
    %c0_i32_1 = arith.constant 0 : i32
    return %c0_i32, %c0_i32_0 : i32, i32
  }
  func.func @transform_8(%arg0: i32) -> (i32, i32) {
    %c0_i32 = arith.constant 0 : i32
    %c0_i32_0 = arith.constant 0 : i32
    %c0_i32_1 = arith.constant 0 : i32
    return %c0_i32, %c0_i32_0 : i32, i32
  }
  func.func @transform_9(%arg0: i32) -> (i32, i32) {
    %c0_i32 = arith.constant 0 : i32
    %c0_i32_0 = arith.constant 0 : i32
    %c0_i32_1 = arith.constant 0 : i32
    return %c0_i32, %c0_i32_0 : i32, i32
  }
  func.func @transform_10(%arg0: i32) -> (i32, i32) {
    %c0_i32 = arith.constant 0 : i32
    %c0_i32_0 = arith.constant 0 : i32
    %c0_i32_1 = arith.constant 0 : i32
    return %c0_i32, %c0_i32_0 : i32, i32
  }
  func.func @transform_11(%arg0: i32) -> (i32, i32) {
    %c0_i32 = arith.constant 0 : i32
    %c0_i32_0 = arith.constant 0 : i32
    %c0_i32_1 = arith.constant 0 : i32
    return %c0_i32, %c0_i32_0 : i32, i32
  }
  func.func @transform_12(%arg0: i32) -> (i32, i32) {
    %c0_i32 = arith.constant 0 : i32
    %c0_i32_0 = arith.constant 0 : i32
    %c0_i32_1 = arith.constant 0 : i32
    return %c0_i32, %c0_i32_0 : i32, i32
  }
  func.func @transform_13(%arg0: i32) -> (i32, i32) {
    %c0_i32 = arith.constant 0 : i32
    %c0_i32_0 = arith.constant 0 : i32
    return %arg0, %c0_i32 : i32, i32
  }
}

</mosaic_0001>

<bundles_post_ra>
// kernel: tpu_custom_call.1
= control target key start
LH: loop header
LB: loop body
LE: loop exit
PB: predicated region body
PF: predicated region fallthrough
CT: control target
= control target key end

     0   :  { %18 = vsyncpa [#allocation3], 0  ;;  %s1657_s0 = inlined_call_operand.hbm [shape: f32[8,128], index: 0, kind: input, shape index: {}]   ;;  %s1658_s1 = inlined_call_operand.hbm [shape: f32[128,128], index: 1, kind: input, shape index: {}]   ;;  %s1659_s2 = inlined_call_operand.vmem [shape: f32[1,128], index: 2, kind: input, shape index: {}]   ;;  %s1660_s3 = inlined_call_operand.hbm [shape: f32[128,128], index: 3, kind: input, shape index: {}]   ;;  %s1661_s4 = inlined_call_operand.vmem [shape: f32[1,128], index: 4, kind: input, shape index: {}]   ;;  %s1662_s5 = inlined_call_operand.hbm [shape: f32[128,128], index: 5, kind: input, shape index: {}]   ;;  %s1663_s6 = inlined_call_operand.vmem [shape: f32[1,128], index: 6, kind: input, shape index: {}]   ;;  %s1664_s7 = inlined_call_operand.hbm [shape: f32[128,128], index: 7, kind: input, shape index: {}]   ;;  %s1665_s8 = inlined_call_operand.vmem [shape: f32[1,128], index: 8, kind: input, shape index: {}]   ;;  %s1666_s9 = inlined_call_operand.hbm [shape: f32[128,128], index: 9, kind: input, shape index: {}]   ;;  %s1667_s10 = inlined_call_operand.vmem [shape: f32[1,128], index: 10, kind: input, shape index: {}]   ;;  %s1668_s11 = inlined_call_operand.hbm [shape: f32[128,128], index: 11, kind: input, shape index: {}]   ;;  %s1669_s12 = inlined_call_operand.vmem [shape: f32[1,128], index: 12, kind: input, shape index: {}]   ;;  %s1670_s13 = inlined_call_operand.hbm [shape: f32[8,128], index: 13, kind: output, shape index: {}]  }
   0x1   :  { %19 = vsyncpa [#allocation6], 0 }
   0x2   :  { %20 = vsyncpa [#allocation9], 0 }
   0x3   :  { %21 = vsyncpa [#allocation12], 0 }
   0x4   :  { %22 = vsyncpa [#allocation4], 0  ;;  %s1382_s25 = smov [#allocation5]   ;;  %s1196_s29 = scalar_lea.hbm %s1658_s1, 2048 }
   0x5   :  { %s38_s26 = sshll.u32 %s1382_s25, 4  ;;  %p1197_p0 = scmp.ne.s32.totalorder %s1658_s1, %s1196_s29  ;;  %s39_s26 = int_to_ptr.vmem [resolvable:$true] %s38_s26 }
   0x6   :  { %p1200_p1 = scmp.lt.u32.totalorder %s1196_s29, %s1658_s1 }
   0x8   :  { %p1202_p2 = pnand %p1200_p1, %p1197_p0 }
   0xa   :  { %1205 = shalt.err (!%p1202_p2)
}
   0xb   :  { %s1206_s17 = scalar_lea.vmem %s39_s26, 2048  ;;  %p1211_p4 = scmp.lt.s32.totalorder %s39_s26, %s39_s26 }
   0xc   :  { %p1207_p3 = scmp.ne.s32.totalorder %s39_s26, %s1206_s17  ;;  %p1212_p5 = scmp.lt.s32.totalorder %s1206_s17, %s1206_s17 }
   0xe   :  { %p1213_p6 = por %p1212_p5, %p1211_p4 }
  0x10   :  { %p1214_p7 = pnand %p1213_p6, %p1207_p3 }
  0x12   :  { %1217 = shalt.err (!%p1214_p7)
}
  0x13   :  { %s1383_s18 = smov 128   ;;  %s1384_s19 = smov 8  }
  0x14   :  { %44 = dma.hbm_to_vmem [thread:$0]  %s1658_s1, 2048, %s39_s26, [#allocation6], %s1383_s18, %s1383_s18, %s1384_s19  }
  0x15   :  { %s1385_s22 = smov [#allocation8]   ;;  %s1386_s24 = smov [#allocation11]  }
  0x16   :  { %s66_s23 = sshll.u32 %s1385_s22, 4  ;;  %s94_s25 = sshll.u32 %s1386_s24, 4  ;;  %s67_s23 = int_to_ptr.vmem [resolvable:$true] %s66_s23  ;;  %s95_s25 = int_to_ptr.vmem [resolvable:$true] %s94_s25 }
  0x17   :  { %s1218_s29 = scalar_lea.hbm %s1662_s5, 2048 }
  0x18   :  { %p1219_p8 = scmp.ne.s32.totalorder %s1662_s5, %s1218_s29  ;;  %p1222_p9 = scmp.lt.u32.totalorder %s1218_s29, %s1662_s5 }
  0x1a   :  { %p1224_p10 = pnand %p1222_p9, %p1219_p8 }
  0x1c   :  { %1227 = shalt.err (!%p1224_p10)
}
  0x1d   :  { %s1228_s1 = scalar_lea.vmem %s67_s23, 2048  ;;  %p1233_p12 = scmp.lt.s32.totalorder %s67_s23, %s67_s23 }
  0x1e   :  { %p1229_p11 = scmp.ne.s32.totalorder %s67_s23, %s1228_s1  ;;  %p1234_p13 = scmp.lt.s32.totalorder %s1228_s1, %s1228_s1 }
  0x20   :  { %p1235_p0 = por %p1234_p13, %p1233_p12 }
  0x22   :  { %p1236_p1 = pnand %p1235_p0, %p1229_p11 }
  0x24   :  { %1239 = shalt.err (!%p1236_p1)
}
  0x25   :  { %72 = dma.hbm_to_vmem [thread:$0]  %s1662_s5, 2048, %s67_s23, [#allocation9], %s1383_s18, %s1383_s18, %s1384_s19  }
  0x26   :  { %s1240_s22 = scalar_lea.hbm %s1666_s9, 2048 }
  0x27   :  { %p1241_p2 = scmp.ne.s32.totalorder %s1666_s9, %s1240_s22  ;;  %p1244_p3 = scmp.lt.u32.totalorder %s1240_s22, %s1666_s9 }
  0x29   :  { %p1246_p4 = pnand %p1244_p3, %p1241_p2 }
  0x2b   :  { %1249 = shalt.err (!%p1246_p4)
}
  0x2c   :  { %s1250_s30 = scalar_lea.vmem %s95_s25, 2048  ;;  %p1255_p6 = scmp.lt.s32.totalorder %s95_s25, %s95_s25 }
  0x2d   :  { %p1251_p5 = scmp.ne.s32.totalorder %s95_s25, %s1250_s30  ;;  %p1256_p7 = scmp.lt.s32.totalorder %s1250_s30, %s1250_s30 }
  0x2f   :  { %p1257_p8 = por %p1256_p7, %p1255_p6 }
  0x31   :  { %p1258_p9 = pnand %p1257_p8, %p1251_p5 }
  0x33   :  { %1261 = shalt.err (!%p1258_p9)
}
  0x34   :  { %100 = dma.hbm_to_vmem [thread:$0]  %s1666_s9, 2048, %s95_s25, [#allocation12], %s1383_s18, %s1383_s18, %s1384_s19  }
  0x35   :  { %s1387_s14 = smov [#allocation2]   ;;  %s1388_s16 = smov [#allocation7]  }
  0x36   :  { %s29_s15 = sshll.u32 %s1387_s14, 4  ;;  %s52_s1 = sshll.u32 %s1388_s16, 4  ;;  %s30_s15 = int_to_ptr.vmem [resolvable:$true] %s29_s15  ;;  %s53_s1 = int_to_ptr.vmem [resolvable:$true] %s52_s1 }
  0x37   :  { %s1262_s20 = scalar_lea.hbm %s1657_s0, 128 }
  0x38   :  { %p1263_p10 = scmp.ne.s32.totalorder %s1657_s0, %s1262_s20  ;;  %p1266_p11 = scmp.lt.u32.totalorder %s1262_s20, %s1657_s0 }
  0x3a   :  { %p1268_p12 = pnand %p1266_p11, %p1263_p10 }
  0x3c   :  { %1271 = shalt.err (!%p1268_p12)
}
  0x3d   :  { %s1272_s9 = scalar_lea.vmem %s30_s15, 128  ;;  %p1277_p0 = scmp.lt.s32.totalorder %s30_s15, %s30_s15 }
  0x3e   :  { %p1273_p13 = scmp.ne.s32.totalorder %s30_s15, %s1272_s9  ;;  %p1278_p1 = scmp.lt.s32.totalorder %s1272_s9, %s1272_s9 }
  0x40   :  { %p1279_p2 = por %p1278_p1, %p1277_p0 }
  0x42   :  { %p1280_p3 = pnand %p1279_p2, %p1273_p13 }
  0x44   :  { %1283 = shalt.err (!%p1280_p3)
}
  0x45   :  { %32 = dma.hbm_to_vmem [thread:$0]  %s1657_s0, 128, %s30_s15, [#allocation3]  }
  0x46   :  { %s1284_s5 = scalar_lea.hbm %s1660_s3, 2048 }
  0x47   :  { %p1285_p4 = scmp.ne.s32.totalorder %s1660_s3, %s1284_s5  ;;  %p1288_p5 = scmp.lt.u32.totalorder %s1284_s5, %s1660_s3 }
  0x49   :  { %p1290_p6 = pnand %p1288_p5, %p1285_p4 }
  0x4b   :  { %1293 = shalt.err (!%p1290_p6)
}
  0x4c   :  { %s1294_s17 = scalar_lea.vmem %s53_s1, 2048  ;;  %p1299_p8 = scmp.lt.s32.totalorder %s53_s1, %s53_s1 }
  0x4d   :  { %p1295_p7 = scmp.ne.s32.totalorder %s53_s1, %s1294_s17  ;;  %p1300_p9 = scmp.lt.s32.totalorder %s1294_s17, %s1294_s17 }
  0x4f   :  { %p1301_p10 = por %p1300_p9, %p1299_p8 }
  0x51   :  { %p1302_p11 = pnand %p1301_p10, %p1295_p7 }
  0x53   :  { %1305 = shalt.err (!%p1302_p11)
}
  0x54   :  { %58 = dma.hbm_to_vmem [thread:$0]  %s1660_s3, 2048, %s53_s1, [#allocation6], %s1383_s18, %s1383_s18, %s1384_s19  }
  0x55   :  { %s1389_s20 = smov [#allocation10]   ;;  %s1390_s22 = smov [#allocation13]  }
  0x56   :  { %s80_s21 = sshll.u32 %s1389_s20, 4  ;;  %s108_s24 = sshll.u32 %s1390_s22, 4  ;;  %s81_s21 = int_to_ptr.vmem [resolvable:$true] %s80_s21  ;;  %s109_s24 = int_to_ptr.vmem [resolvable:$true] %s108_s24 }
  0x57   :  { %s1306_s25 = scalar_lea.hbm %s1664_s7, 2048 }
  0x58   :  { %p1307_p12 = scmp.ne.s32.totalorder %s1664_s7, %s1306_s25  ;;  %p1310_p13 = scmp.lt.u32.totalorder %s1306_s25, %s1664_s7 }
  0x5a   :  { %p1312_p0 = pnand %p1310_p13, %p1307_p12 }
  0x5c   :  { %1315 = shalt.err (!%p1312_p0)
}
  0x5d   :  { %s1316_s3 = scalar_lea.vmem %s81_s21, 2048  ;;  %p1321_p2 = scmp.lt.s32.totalorder %s81_s21, %s81_s21 }
  0x5e   :  { %p1317_p1 = scmp.ne.s32.totalorder %s81_s21, %s1316_s3  ;;  %p1322_p3 = scmp.lt.s32.totalorder %s1316_s3, %s1316_s3 }
  0x60   :  { %p1323_p4 = por %p1322_p3, %p1321_p2 }
  0x62   :  { %p1324_p5 = pnand %p1323_p4, %p1317_p1 }
  0x64   :  { %1327 = shalt.err (!%p1324_p5)
}
  0x65   :  { %86 = dma.hbm_to_vmem [thread:$0]  %s1664_s7, 2048, %s81_s21, [#allocation9], %s1383_s18, %s1383_s18, %s1384_s19  }
  0x66   :  { %s1328_s26 = scalar_lea.hbm %s1668_s11, 2048 }
  0x67   :  { %p1329_p6 = scmp.ne.s32.totalorder %s1668_s11, %s1328_s26  ;;  %p1332_p7 = scmp.lt.u32.totalorder %s1328_s26, %s1668_s11 }
  0x69   :  { %p1334_p8 = pnand %p1332_p7, %p1329_p6 }
  0x6b   :  { %1337 = shalt.err (!%p1334_p8)
}
  0x6c   :  { %s1338_s22 = scalar_lea.vmem %s109_s24, 2048  ;;  %p1343_p10 = scmp.lt.s32.totalorder %s109_s24, %s109_s24 }
  0x6d   :  { %p1339_p9 = scmp.ne.s32.totalorder %s109_s24, %s1338_s22  ;;  %p1344_p11 = scmp.lt.s32.totalorder %s1338_s22, %s1338_s22 }
  0x6f   :  { %p1345_p12 = por %p1344_p11, %p1343_p10 }
  0x71   :  { %p1346_p13 = pnand %p1345_p12, %p1339_p9 }
  0x73   :  { %1349 = shalt.err (!%p1346_p13)
}
  0x74   :  { %114 = dma.hbm_to_vmem [thread:$0]  %s1668_s11, 2048, %s109_s24, [#allocation12], %s1383_s18, %s1383_s18, %s1384_s19  }
  0x75   :  { %1372 = dma.done.wait [#allocation3], 128  }
  0x76   :  { %1373 = vsyncadd [#allocation3], 4294967168 }
  0x77   :  { %1374 = dma.done.wait [#allocation6], 4096  }
  0x78   :  { %1375 = vsyncadd [#allocation6], 4294963200 }
  0x79   :  { %1376 = dma.done.wait [#allocation9], 4096  }
  0x7a   :  { %1377 = vsyncadd [#allocation9], 4294963200 }
  0x7b   :  { %1378 = dma.done.wait [#allocation12], 4096  }
  0x7c   :  { %1379 = vsyncadd [#allocation12], 4294963200  ;;  %v1391_v0 = vmov 0.0|0.0   ;;  %vm1392_vm0 = vmmov 0   ;;  %v1393_v1 = vmov 0.0   ;;  %v139_v2 = vld [vmem:[#allocation5] sm:$0xff] }
  0x7d   :  { %1039 = vmatprep.subr.bf16.mxu0 %v1391_v0  ;;  %861 = vmatprep.mubr.msk.f32.mxu0 %vm1392_vm0, %v1393_v1  ;;  %v140_v3 = vld [vmem:[#allocation5 + $0x8] sm:$0xff]  ;;  %v141_v4 = vld [vmem:[#allocation5 + $0x10] sm:$0xff]  ;;  %v142_v6 = vld [vmem:[#allocation5 + $0x18] sm:$0xff]  ;;  %s1394_s29 = smov [#allocation14]  }
  0x7e   :  { %1063 = vmatprep.subr.bf16.mxu1 %v1391_v0  ;;  %896 = vmatprep.mubr.msk.f32.mxu1 %vm1392_vm0, %v1393_v1  ;;  %v1040_v5 = vpack.c.bf16 %v140_v3, %v139_v2  ;;  %v1043_v7 = vpack.c.bf16 %v142_v6, %v141_v4  ;;  %v143_v8 = vld [vmem:[#allocation5 + $0x20] sm:$0xff]  ;;  %v144_v9 = vld [vmem:[#allocation5 + $0x28] sm:$0xff]  ;;  %v235_v12 = vld [vmem:[#allocation7 + $0x10] sm:$0xff]  ;;  %s709_s30 = sshll.u32 %s1394_s29, 4  ;;  %s710_s30 = int_to_ptr.vmem [resolvable:$true] %s709_s30 }
  0x7f   :  { %v233_v10 = vld [vmem:[#allocation7] sm:$0xff]  ;;  %v234_v11 = vld [vmem:[#allocation7 + $0x8] sm:$0xff]  ;;  %v236_v13 = vld [vmem:[#allocation7 + $0x18] sm:$0xff]  ;;  %v1046_v14 = vpack.c.bf16 %v144_v9, %v143_v8  ;;  %s1350_s5 = scalar_lea.vmem %s710_s30, 128  ;;  %p1355_p1 = scmp.lt.s32.totalorder %s710_s30, %s710_s30 }
  0x80   :  { %1041 = vmatpush3.bf16.msra.mxu0 %v1040_v5  ;;  %v1064_v15 = vpack.c.bf16 %v234_v11, %v233_v10  ;;  %v145_v16 = vld [vmem:[#allocation5 + $0x30] sm:$0xff]  ;;  %v146_v17 = vld [vmem:[#allocation5 + $0x38] sm:$0xff]  ;;  %v1067_v18 = vpack.c.bf16 %v236_v13, %v235_v12  ;;  %v237_v19 = vld [vmem:[#allocation7 + $0x20] sm:$0xff]  ;;  %p1351_p0 = scmp.ne.s32.totalorder %s710_s30, %s1350_s5  ;;  %p1356_p2 = scmp.lt.s32.totalorder %s1350_s5, %s1350_s5 }
  0x81   :  { %1042 = vmatprep.subr.bf16.mxu0 %v1391_v0  ;;  %v238_v20 = vld [vmem:[#allocation7 + $0x28] sm:$0xff]  ;;  %v1049_v21 = vpack.c.bf16 %v146_v17, %v145_v16  ;;  %v147_v22 = vld [vmem:[#allocation5 + $0x40] sm:$0xff]  ;;  %v239_v25 = vld [vmem:[#allocation7 + $0x30] sm:$0xff] }
  0x82   :  { %1065 = vmatpush3.bf16.msra.mxu1 %v1064_v15  ;;  %v148_v23 = vld [vmem:[#allocation5 + $0x48] sm:$0xff]  ;;  %v1070_v24 = vpack.c.bf16 %v238_v20, %v237_v19  ;;  %v240_v26 = vld [vmem:[#allocation7 + $0x38] sm:$0xff]  ;;  %v149_v28 = vld [vmem:[#allocation5 + $0x50] sm:$0xff]  ;;  %p1357_p3 = por %p1356_p2, %p1355_p1 }
  0x83   :  { %1066 = vmatprep.subr.bf16.mxu1 %v1391_v0  ;;  %v1052_v27 = vpack.c.bf16 %v148_v23, %v147_v22  ;;  %v150_v29 = vld [vmem:[#allocation5 + $0x58] sm:$0xff]  ;;  %v1073_v30 = vpack.c.bf16 %v240_v26, %v239_v25  ;;  %v241_v31 = vld [vmem:[#allocation7 + $0x40] sm:$0xff]  ;;  %v242_v32 = vld [vmem:[#allocation7 + $0x48] sm:$0xff] }
  0x84   :  { %1044 = vmatpush3.bf16.msra.mxu0 %v1043_v7  ;;  %v1055_v33 = vpack.c.bf16 %v150_v29, %v149_v28  ;;  %v151_v34 = vld [vmem:[#allocation5 + $0x60] sm:$0xff]  ;;  %v152_v35 = vld [vmem:[#allocation5 + $0x68] sm:$0xff]  ;;  %v1076_v36 = vpack.c.bf16 %v242_v32, %v241_v31  ;;  %v243_v37 = vld [vmem:[#allocation7 + $0x50] sm:$0xff]  ;;  %p1358_p4 = pnand %p1357_p3, %p1351_p0 }
  0x85   :  { %1045 = vmatprep.subr.bf16.mxu0 %v1391_v0  ;;  %v244_v38 = vld [vmem:[#allocation7 + $0x58] sm:$0xff]  ;;  %v1058_v39 = vpack.c.bf16 %v152_v35, %v151_v34  ;;  %v153_v40 = vld [vmem:[#allocation5 + $0x70] sm:$0xff]  ;;  %v245_v43 = vld [vmem:[#allocation7 + $0x60] sm:$0xff] }
  0x86   :  { %1068 = vmatpush3.bf16.msra.mxu1 %v1067_v18  ;;  %v154_v41 = vld [vmem:[#allocation5 + $0x78] sm:$0xff]  ;;  %v1079_v42 = vpack.c.bf16 %v244_v38, %v243_v37  ;;  %v246_v44 = vld [vmem:[#allocation7 + $0x68] sm:$0xff]  ;;  %v247_v48 = vld [vmem:[#allocation7 + $0x70] sm:$0xff] }
  0x87   :  { %1069 = vmatprep.subr.bf16.mxu1 %v1391_v0  ;;  %v1061_v45 = vpack.c.bf16 %v154_v41, %v153_v40  ;;  %v1082_v46 = vpack.c.bf16 %v246_v44, %v245_v43  ;;  %v138_v47 = vld [vmem:[#allocation2] sm:$0xff]  ;;  %v327_v51 = vld [vmem:[#allocation8] sm:$0xff]  ;;  %v328_v52 = vld [vmem:[#allocation8 + $0x8] sm:$0xff] }
  0x88   :  { %1047 = vmatpush3.bf16.msra.mxu0 %v1046_v14  ;;  %v248_v49 = vld [vmem:[#allocation7 + $0x78] sm:$0xff]  ;;  %v329_v53 = vld [vmem:[#allocation8 + $0x10] sm:$0xff]  ;;  %v1088_v54 = vpack.c.bf16 %v328_v52, %v327_v51  ;;  %v331_v57 = vld [vmem:[#allocation8 + $0x20] sm:$0xff] }
  0x89   :  { %1048 = vmatprep.subr.bf16.mxu0 %v1391_v0  ;;  %v1085_v50 = vpack.c.bf16 %v248_v49, %v247_v48  ;;  %v330_v55 = vld [vmem:[#allocation8 + $0x18] sm:$0xff]  ;;  %v332_v58 = vld [vmem:[#allocation8 + $0x28] sm:$0xff]  ;;  %v333_v60 = vld [vmem:[#allocation8 + $0x30] sm:$0xff] }
  0x8a   :  { %1071 = vmatpush3.bf16.msra.mxu1 %v1070_v24  ;;  %v1091_v56 = vpack.c.bf16 %v330_v55, %v329_v53  ;;  %v1094_v59 = vpack.c.bf16 %v332_v58, %v331_v57  ;;  %v334_v61 = vld [vmem:[#allocation8 + $0x38] sm:$0xff]  ;;  %v335_v63 = vld [vmem:[#allocation8 + $0x40] sm:$0xff]  ;;  %v336_v2 = vld [vmem:[#allocation8 + $0x48] sm:$0xff] }
  0x8b   :  { %1072 = vmatprep.subr.bf16.mxu1 %v1391_v0  ;;  %v1097_v62 = vpack.c.bf16 %v334_v61, %v333_v60  ;;  %v1100_v3 = vpack.c.bf16 %v336_v2, %v335_v63  ;;  %v337_v4 = vld [vmem:[#allocation8 + $0x50] sm:$0xff]  ;;  %v338_v5 = vld [vmem:[#allocation8 + $0x58] sm:$0xff]  ;;  %v339_v7 = vld [vmem:[#allocation8 + $0x60] sm:$0xff] }
  0x8c   :  { %1050 = vmatpush3.bf16.msra.mxu0 %v1049_v21  ;;  %v1103_v6 = vpack.c.bf16 %v338_v5, %v337_v4  ;;  %v340_v8 = vld [vmem:[#allocation8 + $0x68] sm:$0xff]  ;;  %v721_v10 = vld [vmem:[%s1659_s2] ss:$0 sm:$0xff]  ;;  %v341_v15 = vld [vmem:[#allocation8 + $0x70] sm:$0xff] }
  0x8d   :  { %1051 = vmatprep.subr.bf16.mxu0 %v1391_v0  ;;  %v1106_v9 = vpack.c.bf16 %v340_v8, %v339_v7  ;;  %v342_v16 = vld [vmem:[#allocation8 + $0x78] sm:$0xff]  ;;  %v421_v18 = vld [vmem:[#allocation10] sm:$0xff]  ;;  %v422_v19 = vld [vmem:[#allocation10 + $0x8] sm:$0xff] }
  0x8e   :  { %1074 = vmatpush3.bf16.msra.mxu1 %v1073_v30  ;;  %v1109_v17 = vpack.c.bf16 %v342_v16, %v341_v15  ;;  %v423_v20 = vld [vmem:[#allocation10 + $0x10] sm:$0xff]  ;;  %v1112_v21 = vpack.c.bf16 %v422_v19, %v421_v18  ;;  %v424_v22 = vld [vmem:[#allocation10 + $0x18] sm:$0xff]  ;;  %v425_v24 = vld [vmem:[#allocation10 + $0x20] sm:$0xff] }
  0x8f   :  { %1075 = vmatprep.subr.bf16.mxu1 %v1391_v0  ;;  %v1115_v23 = vpack.c.bf16 %v424_v22, %v423_v20  ;;  %v426_v25 = vld [vmem:[#allocation10 + $0x28] sm:$0xff]  ;;  %v428_v28 = vld [vmem:[#allocation10 + $0x38] sm:$0xff]  ;;  %v429_v30 = vld [vmem:[#allocation10 + $0x40] sm:$0xff] }
  0x90   :  { %1053 = vmatpush3.bf16.msra.mxu0 %v1052_v27  ;;  %v1118_v26 = vpack.c.bf16 %v426_v25, %v425_v24  ;;  %v427_v27 = vld [vmem:[#allocation10 + $0x30] sm:$0xff]  ;;  %v430_v31 = vld [vmem:[#allocation10 + $0x48] sm:$0xff]  ;;  %v432_v34 = vld [vmem:[#allocation10 + $0x58] sm:$0xff] }
  0x91   :  { %1054 = vmatprep.subr.bf16.mxu0 %v1391_v0  ;;  %v1121_v29 = vpack.c.bf16 %v428_v28, %v427_v27  ;;  %v1124_v32 = vpack.c.bf16 %v430_v31, %v429_v30  ;;  %v434_v37 = vld [vmem:[#allocation10 + $0x68] sm:$0xff]  ;;  %v435_v44 = vld [vmem:[#allocation10 + $0x70] sm:$0xff]  ;;  %v518_v51 = vld [vmem:[#allocation11 + $0x18] sm:$0xff] }
  0x92   :  { %1077 = vmatpush3.bf16.msra.mxu1 %v1076_v36  ;;  %v433_v36 = vld [vmem:[#allocation10 + $0x60] sm:$0xff]  ;;  %v516_v48 = vld [vmem:[#allocation11 + $0x8] sm:$0xff]  ;;  %v517_v49 = vld [vmem:[#allocation11 + $0x10] sm:$0xff] }
  0x93   :  { %1078 = vmatprep.subr.bf16.mxu1 %v1391_v0  ;;  %v1130_v38 = vpack.c.bf16 %v434_v37, %v433_v36  ;;  %v1139_v52 = vpack.c.bf16 %v518_v51, %v517_v49  ;;  %v519_v53 = vld [vmem:[#allocation11 + $0x20] sm:$0xff]  ;;  %v522_v57 = vld [vmem:[#allocation11 + $0x38] sm:$0xff]  ;;  %v524_v60 = vld [vmem:[#allocation11 + $0x48] sm:$0xff] }
  0x94   :  { %1056 = vmatpush3.bf16.msra.mxu0 %v1055_v33  ;;  %v431_v33 = vld [vmem:[#allocation10 + $0x50] sm:$0xff]  ;;  %v526_v63 = vld [vmem:[#allocation11 + $0x58] sm:$0xff]  ;;  %v528_v4 = vld [vmem:[#allocation11 + $0x68] sm:$0xff] }
  0x95   :  { %1057 = vmatprep.subr.bf16.mxu0 %v1391_v0  ;;  %v1127_v35 = vpack.c.bf16 %v432_v34, %v431_v33  ;;  %v610_v15 = vld [vmem:[#allocation13 + $0x8] sm:$0xff]  ;;  %v611_v16 = vld [vmem:[#allocation13 + $0x10] sm:$0xff]  ;;  %v612_v18 = vld [vmem:[#allocation13 + $0x18] sm:$0xff] }
  0x96   :  { %1080 = vmatpush3.bf16.msra.mxu1 %v1079_v42  ;;  %v1163_v19 = vpack.c.bf16 %v612_v18, %v611_v16  ;;  %v613_v20 = vld [vmem:[#allocation13 + $0x20] sm:$0xff]  ;;  %v619_v28 = vld [vmem:[#allocation13 + $0x50] sm:$0xff]  ;;  %v724_v34 = vld [vmem:[%s1665_s8] ss:$0 sm:$0xff] }
  0x97   :  { %1081 = vmatprep.subr.bf16.mxu1 %v1391_v0  ;;  %v617_v25 = vld [vmem:[#allocation13 + $0x40] sm:$0xff] }
  0x98   :  { %1059 = vmatpush3.bf16.msra.mxu0 %v1058_v39  ;;  %v722_v39 = vld [vmem:[%s1661_s4] ss:$0 sm:$0xff]  ;;  %v621_v31 = vld [vmem:[#allocation13 + $0x60] sm:$0xff] }
  0x99   :  { %1060 = vmatprep.subr.bf16.mxu0 %v1391_v0 }
  0x9a   :  { %1083 = vmatpush3.bf16.msra.mxu1 %v1082_v46 }
  0x9b   :  { %1084 = vmatprep.subr.bf16.mxu1 %v1391_v0 }
  0x9c   :  { %1062 = vmatpush3.bf16.msra.mxu0 %v1061_v45  ;;  %v436_v45 = vld [vmem:[#allocation10 + $0x78] sm:$0xff] }
  0x9d   :  { %1087 = vmatprep.subr.bf16.mxu0 %v1391_v0  ;;  %v1133_v46 = vpack.c.bf16 %v436_v45, %v435_v44 }
  0x9e   :  { %1086 = vmatpush3.bf16.msra.mxu1 %v1085_v50 }
  0x9f   :  { %862 = vmatmul.mubr.f32.vlgmr.msra.gmra.mrb[0].mxu0 %v138_v47  ;;  %1111 = vmatprep.subr.bf16.mxu1 %v1391_v0  ;;  %v515_v47 = vld [vmem:[#allocation11] sm:$0xff] }
  0xa0   :  { %931 = vmatprep.mubr.msk.f32.mxu0 %vm1392_vm0, %v1393_v1  ;;  %1089 = vmatpush3.bf16.msra.mxu0 %v1088_v54  ;;  %v1136_v50 = vpack.c.bf16 %v516_v48, %v515_v47  ;;  %v520_v54 = vld [vmem:[#allocation11 + $0x28] sm:$0xff] }
  0xa1   :  { %1090 = vmatprep.subr.bf16.mxu0 %v1391_v0  ;;  %v1142_v55 = vpack.c.bf16 %v520_v54, %v519_v53 }
  0xa4   :  { %1092 = vmatpush3.bf16.msra.mxu0 %v1091_v56  ;;  %v521_v56 = vld [vmem:[#allocation11 + $0x30] sm:$0xff] }
  0xa5   :  { %1093 = vmatprep.subr.bf16.mxu0 %v1391_v0  ;;  %v1145_v58 = vpack.c.bf16 %v522_v57, %v521_v56 }
  0xa8   :  { %1095 = vmatpush3.bf16.msra.mxu0 %v1094_v59  ;;  %v523_v59 = vld [vmem:[#allocation11 + $0x40] sm:$0xff] }
  0xa9   :  { %1096 = vmatprep.subr.bf16.mxu0 %v1391_v0  ;;  %v1148_v61 = vpack.c.bf16 %v524_v60, %v523_v59 }
  0xac   :  { %1098 = vmatpush3.bf16.msra.mxu0 %v1097_v62  ;;  %v525_v62 = vld [vmem:[#allocation11 + $0x50] sm:$0xff] }
  0xad   :  { %1099 = vmatprep.subr.bf16.mxu0 %v1391_v0  ;;  %v1151_v2 = vpack.c.bf16 %v526_v63, %v525_v62 }
  0xb0   :  { %1101 = vmatpush3.bf16.msra.mxu0 %v1100_v3  ;;  %v527_v3 = vld [vmem:[#allocation11 + $0x60] sm:$0xff] }
  0xb1   :  { %1102 = vmatprep.subr.bf16.mxu0 %v1391_v0  ;;  %v1154_v5 = vpack.c.bf16 %v528_v4, %v527_v3 }
  0xb4   :  { %1104 = vmatpush3.bf16.msra.mxu0 %v1103_v6  ;;  %v723_v6 = vld [vmem:[%s1663_s6] ss:$0 sm:$0xff] }
  0xb5   :  { %1105 = vmatprep.subr.bf16.mxu0 %v1391_v0 }
  0xb8   :  { %1107 = vmatpush3.bf16.msra.mxu0 %v1106_v9 }
  0xb9   :  { %1108 = vmatprep.subr.bf16.mxu0 %v1391_v0 }
  0xbc   :  { %1110 = vmatpush3.bf16.msra.mxu0 %v1109_v17 }
  0xbd   :  { %1135 = vmatprep.subr.bf16.mxu0 %v1391_v0 }
 0x172   :  { %v228_v11 = vpop.f32.mrb[0].mxu0 }
 0x173   :  { %v229_v12 = vadd.f32 %v721_v10, %v228_v11  ;;  %v863_v13 = vpop.f32.mrb[1].mxu0  ;;  %v529_v11 = vld [vmem:[#allocation11 + $0x70] sm:$0xff] }
 0x175   :  { %v232_v14 = vmax.f32 %v229_v12, 0.0  ;;  %v530_v12 = vld [vmem:[#allocation11 + $0x78] sm:$0xff] }
 0x176   :  { %v1157_v13 = vpack.c.bf16 %v530_v12, %v529_v11 }
 0x177   :  { %897 = vmatmul.mubr.f32.vlgmr.msra.gmra.mrb[0].mxu1 %v232_v14  ;;  %v609_v14 = vld [vmem:[#allocation13] sm:$0xff] }
 0x178   :  { %966 = vmatprep.mubr.msk.f32.mxu1 %vm1392_vm0, %v1393_v1  ;;  %1113 = vmatpush3.bf16.msra.mxu1 %v1112_v21  ;;  %v1160_v17 = vpack.c.bf16 %v610_v15, %v609_v14  ;;  %v614_v21 = vld [vmem:[#allocation13 + $0x28] sm:$0xff] }
 0x179   :  { %1114 = vmatprep.subr.bf16.mxu1 %v1391_v0  ;;  %v1166_v22 = vpack.c.bf16 %v614_v21, %v613_v20 }
 0x17c   :  { %1116 = vmatpush3.bf16.msra.mxu1 %v1115_v23  ;;  %v616_v23 = vld [vmem:[#allocation13 + $0x38] sm:$0xff] }
 0x17d   :  { %1117 = vmatprep.subr.bf16.mxu1 %v1391_v0 }
 0x180   :  { %1119 = vmatpush3.bf16.msra.mxu1 %v1118_v26  ;;  %v618_v26 = vld [vmem:[#allocation13 + $0x48] sm:$0xff] }
 0x181   :  { %1120 = vmatprep.subr.bf16.mxu1 %v1391_v0  ;;  %v1172_v27 = vpack.c.bf16 %v618_v26, %v617_v25 }
 0x184   :  { %1122 = vmatpush3.bf16.msra.mxu1 %v1121_v29  ;;  %v620_v29 = vld [vmem:[#allocation13 + $0x58] sm:$0xff] }
 0x185   :  { %1123 = vmatprep.subr.bf16.mxu1 %v1391_v0  ;;  %v1175_v30 = vpack.c.bf16 %v620_v29, %v619_v28 }
 0x188   :  { %1125 = vmatpush3.bf16.msra.mxu1 %v1124_v32  ;;  %v622_v32 = vld [vmem:[#allocation13 + $0x68] sm:$0xff] }
 0x189   :  { %1126 = vmatprep.subr.bf16.mxu1 %v1391_v0  ;;  %v1178_v33 = vpack.c.bf16 %v622_v32, %v621_v31 }
 0x18c   :  { %1128 = vmatpush3.bf16.msra.mxu1 %v1127_v35 }
 0x18d   :  { %1129 = vmatprep.subr.bf16.mxu1 %v1391_v0 }
 0x190   :  { %1131 = vmatpush3.bf16.msra.mxu1 %v1130_v38 }
 0x191   :  { %1132 = vmatprep.subr.bf16.mxu1 %v1391_v0 }
 0x194   :  { %1134 = vmatpush3.bf16.msra.mxu1 %v1133_v46  ;;  %v726_v46 = vld [vmem:[%s1669_s12] ss:$0 sm:$0xff] }
 0x195   :  { %1159 = vmatprep.subr.bf16.mxu1 %v1391_v0 }
 0x24a   :  { %v322_v40 = vpop.f32.mrb[0].mxu1 }
 0x24b   :  { %v323_v41 = vadd.f32 %v722_v39, %v322_v40  ;;  %v898_v42 = vpop.f32.mrb[1].mxu1  ;;  %v623_v39 = vld [vmem:[#allocation13 + $0x70] sm:$0xff]  ;;  %v624_v40 = vld [vmem:[#allocation13 + $0x78] sm:$0xff] }
 0x24c   :  { %v725_v42 = vld [vmem:[%s1667_s10] ss:$0 sm:$0xff] }
 0x24d   :  { %v326_v43 = vmax.f32 %v323_v41, 0.0  ;;  %v1181_v41 = vpack.c.bf16 %v624_v40, %v623_v39 }
 0x24f   :  { %932 = vmatmul.mubr.f32.vlgmr.msra.gmra.mrb[2].mxu0 %v326_v43 }
 0x250   :  { %1001 = vmatprep.mubr.msk.f32.mxu0 %vm1392_vm0, %v1393_v1  ;;  %1137 = vmatpush3.bf16.msra.mxu0 %v1136_v50 }
 0x251   :  { %1138 = vmatprep.subr.bf16.mxu0 %v1391_v0 }
 0x254   :  { %1140 = vmatpush3.bf16.msra.mxu0 %v1139_v52 }
 0x255   :  { %1141 = vmatprep.subr.bf16.mxu0 %v1391_v0 }
 0x258   :  { %1143 = vmatpush3.bf16.msra.mxu0 %v1142_v55 }
 0x259   :  { %1144 = vmatprep.subr.bf16.mxu0 %v1391_v0 }
 0x25c   :  { %1146 = vmatpush3.bf16.msra.mxu0 %v1145_v58 }
 0x25d   :  { %1147 = vmatprep.subr.bf16.mxu0 %v1391_v0 }
 0x260   :  { %1149 = vmatpush3.bf16.msra.mxu0 %v1148_v61 }
 0x261   :  { %1150 = vmatprep.subr.bf16.mxu0 %v1391_v0 }
 0x264   :  { %1152 = vmatpush3.bf16.msra.mxu0 %v1151_v2 }
 0x265   :  { %1153 = vmatprep.subr.bf16.mxu0 %v1391_v0 }
 0x268   :  { %1155 = vmatpush3.bf16.msra.mxu0 %v1154_v5 }
 0x269   :  { %1156 = vmatprep.subr.bf16.mxu0 %v1391_v0 }
 0x26c   :  { %1158 = vmatpush3.bf16.msra.mxu0 %v1157_v13 }
 0x322   :  { %v416_v7 = vpop.f32.mrb[2].mxu0 }
 0x323   :  { %v417_v8 = vadd.f32 %v723_v6, %v416_v7  ;;  %v933_v9 = vpop.f32.mrb[3].mxu0 }
 0x325   :  { %v420_v10 = vmax.f32 %v417_v8, 0.0 }
 0x327   :  { %967 = vmatmul.mubr.f32.vlgmr.msra.gmra.mrb[2].mxu1 %v420_v10 }
 0x328   :  { %1036 = vmatprep.mubr.msk.f32.mxu1 %vm1392_vm0, %v1393_v1  ;;  %1161 = vmatpush3.bf16.msra.mxu1 %v1160_v17  ;;  %v615_v1 = vld [vmem:[#allocation13 + $0x30] sm:$0xff] }
 0x329   :  { %1162 = vmatprep.subr.bf16.mxu1 %v1391_v0  ;;  %v1169_v24 = vpack.c.bf16 %v616_v23, %v615_v1 }
 0x32c   :  { %1164 = vmatpush3.bf16.msra.mxu1 %v1163_v19 }
 0x32d   :  { %1165 = vmatprep.subr.bf16.mxu1 %v1391_v0 }
 0x330   :  { %1167 = vmatpush3.bf16.msra.mxu1 %v1166_v22 }
 0x331   :  { %1168 = vmatprep.subr.bf16.mxu1 %v1391_v0 }
 0x334   :  { %1170 = vmatpush3.bf16.msra.mxu1 %v1169_v24 }
 0x335   :  { %1171 = vmatprep.subr.bf16.mxu1 %v1391_v0 }
 0x338   :  { %1173 = vmatpush3.bf16.msra.mxu1 %v1172_v27 }
 0x339   :  { %1174 = vmatprep.subr.bf16.mxu1 %v1391_v0 }
 0x33c   :  { %1176 = vmatpush3.bf16.msra.mxu1 %v1175_v30 }
 0x33d   :  { %1177 = vmatprep.subr.bf16.mxu1 %v1391_v0 }
 0x340   :  { %1179 = vmatpush3.bf16.msra.mxu1 %v1178_v33 }
 0x341   :  { %1180 = vmatprep.subr.bf16.mxu1 %v1391_v0 }
 0x344   :  { %1182 = vmatpush3.bf16.msra.mxu1 %v1181_v41 }
 0x3fa   :  { %v510_v35 = vpop.f32.mrb[2].mxu1 }
 0x3fb   :  { %v511_v36 = vadd.f32 %v724_v34, %v510_v35  ;;  %v968_v37 = vpop.f32.mrb[3].mxu1 }
 0x3fd   :  { %v514_v38 = vmax.f32 %v511_v36, 0.0 }
 0x3ff   :  { %1002 = vmatmul.mubr.f32.vlgmr.msra.gmra.mrb[4].mxu0 %v514_v38 }
 0x4d2   :  { %v604_v43 = vpop.f32.mrb[4].mxu0 }
 0x4d3   :  { %v605_v44 = vadd.f32 %v725_v42, %v604_v43  ;;  %v1003_v0 = vpop.f32.mrb[5].mxu0 }
 0x4d5   :  { %v608_v45 = vmax.f32 %v605_v44, 0.0 }
 0x4d7   :  { %1037 = vmatmul.mubr.f32.vlgmr.msra.gmra.mrb[4].mxu1 %v608_v45 }
 0x5aa   :  { %v698_v47 = vpop.f32.mrb[4].mxu1 }
 0x5ab   :  { %v699_v48 = vadd.f32 %v726_v46, %v698_v47  ;;  %v1038_v49 = vpop.f32.mrb[5].mxu1 }
 0x5ad   :  { %702 = vst [vmem:[#allocation14] sm:$0xff] %v699_v48 }
 0x5ae   :  { %1361 = shalt.err (!%p1358_p4)
}
 0x5af   :  { %s1362_s1 = scalar_lea.hbm %s1670_s13, 128 }
 0x5b0   :  { %p1363_p5 = scmp.ne.s32.totalorder %s1670_s13, %s1362_s1  ;;  %p1366_p6 = scmp.lt.u32.totalorder %s1362_s1, %s1670_s13 }
 0x5b2   :  { %p1368_p7 = pnand %p1366_p6, %p1363_p5 }
 0x5b4   :  { %1371 = shalt.err (!%p1368_p7)
}
 0x5b5   :  { %712 = dma.vmem_to_hbm [thread:$0]  %s710_s30, 128, %s1670_s13, [#allocation4]  }
 0x5b6   :  { %1380 = dma.done.wait [#allocation4], 128  }
 0x5b7   :  { %1381 = vsyncadd [#allocation4], 4294967168 }
 0x5b8   :  { %716 = vsyncpa [#allocation3], 1 }
 0x5b9   :  { %717 = vsyncpa [#allocation6], 1 }
 0x5ba   :  { %718 = vsyncpa [#allocation9], 1 }
 0x5bb   :  { %719 = vsyncpa [#allocation12], 1 }
 0x5bc   :  { %720 = vsyncpa [#allocation4], 1 }

</bundles_post_ra>
